<compile_context>
chip_gen: v5e
topology: v5e:2x2
jax: 0.10.0
libtpu: 0.0.40
codegen_flags: <defaults>
</compile_context>

<pallas_src>
import functools

import jax
import jax.numpy as jnp
from jax.experimental import pallas as pl
from jax.experimental.pallas import tpu as pltpu

SRC_LEN, TGT_LEN, BATCH, EMB, HID, VOCAB = 8, 8, 2, 32, 32, 16
OUT_LANES = 128          # lane-dense merged output width: [dec_out | attn | zero pad]


# --------------------------- fused NMT forward kernel ---------------------------
def _nmt_kernel(S, T, B, E, H, V, offs,
                len_ref,      # SMEM (B,) int32            -- scalar prefetch (src lengths)
                ids_ref,      # VMEM ((S+T)*B, 1) int32    -- src then tgt ids, time-major flat
                w_ref,        # VMEM (R, W) f32            -- packed parameters
                out_ref,      # VMEM (B*T, OUT_LANES) f32  -- merged output slab
                mb_scr,       # VMEM (S*B, H) f32          -- encoder memory bank (time-major)
                hd_scr):      # VMEM (T*B, H) f32          -- decoder hidden states (time-major)
    f32 = jnp.float32

    def mat(name, rows, cols):
        o = offs[name]
        return w_ref[o:o + rows, 0:cols]          # static slice -> one hoisted load

    # ---- fused embedding lookup: one-hot on the MXU instead of an XLA gather ----
    n_ids = (S + T) * B
    ids = ids_ref[...]                                                  # (n_ids, 1) int32
    vpos = jax.lax.broadcasted_iota(jnp.int32, (n_ids, V), 1)
    onehot = (ids == vpos).astype(f32)                                  # (n_ids, V)
    src_emb = jnp.dot(onehot[0:S * B, :], mat("emb_src", V, E),
                      preferred_element_type=f32)                       # (S*B, E)
    tgt_emb = jnp.dot(onehot[S * B:, :], mat("emb_tgt", V, E),
                      preferred_element_type=f32)                       # (T*B, E)

    # ---- hoisted input projections, kept as register values ----
    xproj = jnp.dot(src_emb, mat("enc_wih", E, H),
                    preferred_element_type=f32) + mat("enc_b", 1, H)    # (S*B, H)
    yproj = jnp.dot(tgt_emb, mat("dec_wih", E, H),
                    preferred_element_type=f32) + mat("dec_b", 1, H)    # (T*B, H)

    # per-batch lengths as a (B,1) column, used to freeze padded encoder steps
    bidx = jax.lax.broadcasted_iota(jnp.int32, (B, 1), 0)
    len_col = jnp.zeros((B, 1), jnp.int32)
    for b in range(B):
        len_col = jnp.where(bidx == b, len_ref[b], len_col)

    # ---- encoder recurrence (fully unrolled; only h @ W_hh is serial) ----
    enc_whh = mat("enc_whh", H, H)
    h = jnp.zeros((B, H), f32)
    for s in range(S):
        h_new = jnp.tanh(xproj[s * B:(s + 1) * B, :]
                         + jnp.dot(h, enc_whh, preferred_element_type=f32))
        h = jnp.where(len_col > s, h_new, h)       # packed-sequence parity: freeze past length
        mb_scr[s * B:(s + 1) * B, :] = h           # one contiguous (B,H) slab store per step

    # ---- decoder recurrence, initialized with the encoder final state ----
    dec_whh = mat("dec_whh", H, H)
    for t in range(T):
        h = jnp.tanh(yproj[t * B:(t + 1) * B, :]
                     + jnp.dot(h, dec_whh, preferred_element_type=f32))
        hd_scr[t * B:(t + 1) * B, :] = h

    # ---- batch-major views via strided reads of the time-major scratches ----
    mb_bm = jnp.concatenate([mb_scr[pl.ds(b, S, stride=B), :] for b in range(B)], axis=0)  # (B*S, H)
    hd_bm = jnp.concatenate([hd_scr[pl.ds(b, T, stride=B), :] for b in range(B)], axis=0)  # (B*T, H)

    # ---- batch-hoisted projections: single (B*T,H)x(H,H) MXU matmuls ----
    hq_bm = jnp.dot(hd_bm, mat("wa", H, H), preferred_element_type=f32)  # (B*T, H)
    hh_bm = jnp.dot(hd_bm, mat("wh", H, H), preferred_element_type=f32)  # (B*T, H)

    # ---- per-batch attention: only the score & context matmuls remain per b ----
    pos = jax.lax.broadcasted_iota(jnp.int32, (T, S), 1)
    ctx_list, attn_list = [], []
    for b in range(B):
        mb_b = mb_bm[b * S:(b + 1) * S, :]                               # (S, H)
        hq_b = hq_bm[b * T:(b + 1) * T, :]                               # (T, H)
        sc_b = jnp.dot(hq_b, mb_b.T, preferred_element_type=f32)         # (T, S)
        sc_b = jnp.where(pos < len_ref[b], sc_b, -1e30)                  # length mask
        m = jnp.max(sc_b, axis=-1, keepdims=True)
        p = jnp.exp(sc_b - m)
        a_b = p / jnp.sum(p, axis=-1, keepdims=True)                     # (T, S)
        ctx_list.append(jnp.dot(a_b, mb_b, preferred_element_type=f32))  # (T, H)
        attn_list.append(a_b)
    ctx_bm = jnp.concatenate(ctx_list, axis=0)                           # (B*T, H)
    attn_bm = jnp.concatenate(attn_list, axis=0)                         # (B*T, S)

    # ---- output projection (batch-hoisted) ----
    o_bm = jnp.tanh(jnp.dot(ctx_bm, mat("wc", H, H), preferred_element_type=f32)
                    + hh_bm + mat("bo", 1, H))                           # (B*T, H)

    # ---- merged, lane-dense output slab: [dec_out | attn | zero pad] ----
    out_ref[...] = jnp.zeros((B * T, OUT_LANES), f32)
    out_ref[:, 0:H] = o_bm
    out_ref[:, H:H + S] = attn_bm


# ------------------------------- host-side wrapper -------------------------------
def _pack_params(params):
    """Concatenate all parameters into one (R, W) slab; return (slab, static offsets, W)."""
    E = params["emb_src"].shape[1]
    H = params["enc_whh"].shape[0]
    W = max(E, H)
    order = ["emb_src", "emb_tgt", "enc_wih", "enc_whh", "dec_wih", "dec_whh",
             "wa", "wc", "wh", "enc_b", "dec_b", "bo"]
    offs, pieces, row = {}, [], 0
    for name in order:
        a = params[name].astype(jnp.float32)
        if a.shape[1] < W:
            a = jnp.pad(a, ((0, 0), (0, W - a.shape[1])))
        offs[name] = row
        row += a.shape[0]
        pieces.append(a)
    return jnp.concatenate(pieces, axis=0), offs, W


def nmt_forward(src, tgt, lengths, params):
    """src: [S, B] int32, tgt: [T, B] int32, lengths: [B] int32."""
    S, B = src.shape
    tgt_in = tgt[:-1]                                   # teacher forcing: drop last token
    T = tgt_in.shape[0]
    V, E = params["emb_src"].shape
    H = params["enc_whh"].shape[0]

    packed, offs, W = _pack_params(params)
    R = packed.shape[0]

    ids = jnp.concatenate([src.reshape(S * B), tgt_in.reshape(T * B)])
    ids = ids.astype(jnp.int32).reshape((S + T) * B, 1)
    lengths = lengths.astype(jnp.int32)

    kernel = functools.partial(_nmt_kernel, S, T, B, E, H, V, offs)

    out = pl.pallas_call(
        kernel,
        out_shape=jax.ShapeDtypeStruct((B * T, OUT_LANES), jnp.float32),
        grid_spec=pltpu.PrefetchScalarGridSpec(
            num_scalar_prefetch=1,                       # lengths -> SMEM
            grid=(1,),                                   # single fused invocation
            in_specs=[
                pl.BlockSpec(((S + T) * B, 1), lambda i, lens: (0, 0)),   # token ids
                pl.BlockSpec((R, W), lambda i, lens: (0, 0)),             # packed params
            ],
            out_specs=pl.BlockSpec((B * T, OUT_LANES), lambda i, lens: (0, 0)),
            scratch_shapes=[
                pltpu.VMEM((S * B, H), jnp.float32),     # encoder memory bank (time-major)
                pltpu.VMEM((T * B, H), jnp.float32),     # decoder hidden states (time-major)
            ],
        ),
        compiler_params=pltpu.CompilerParams(dimension_semantics=("arbitrary",)),
    )(lengths, ids, packed)

    # tiny (B,T,*) -> (T,B,*) relayout + lane slicing done by XLA outside (<1 KiB of data).
    dec_out = out[:, :H].reshape(B, T, H).transpose(1, 0, 2)               # [T-1, B, H]
    attns = {"std": out[:, H:H + S].reshape(B, T, S).transpose(1, 0, 2)}   # [T-1, B, S]
    return dec_out, attns


def init_params(key):
    ks = jax.random.split(key, 11)
    n = lambda k, shape: (0.1 * jax.random.normal(k, shape)).astype(jnp.float32)
    return {
        "emb_src": n(ks[0], (VOCAB, EMB)),
        "emb_tgt": n(ks[1], (VOCAB, EMB)),
        "enc_wih": n(ks[2], (EMB, HID)),
        "enc_whh": n(ks[3], (HID, HID)),
        "enc_b":   n(ks[4], (1, HID)),
        "dec_wih": n(ks[5], (EMB, HID)),
        "dec_whh": n(ks[6], (HID, HID)),
        "dec_b":   n(ks[7], (1, HID)),
        "wa":      n(ks[8], (HID, HID)),
        "wc":      n(ks[9], (HID, HID)),
        "wh":      n(ks[10], (HID, HID)),
        "bo":      jnp.zeros((1, HID), jnp.float32),
    }


if __name__ == "__main__":
    key = jax.random.PRNGKey(0)
    kp, ks, kt = jax.random.split(key, 3)

    params = init_params(kp)
    src = jax.random.randint(ks, (SRC_LEN, BATCH), 0, VOCAB, dtype=jnp.int32)
    tgt = jax.random.randint(kt, (TGT_LEN, BATCH), 0, VOCAB, dtype=jnp.int32)
    lengths = jnp.array([SRC_LEN, SRC_LEN - 3], dtype=jnp.int32)

    dec_out, attns = jax.jit(nmt_forward)(src, tgt, lengths, params)
    jax.block_until_ready((dec_out, attns["std"]))

    assert dec_out.shape == (TGT_LEN - 1, BATCH, HID)
    assert attns["std"].shape == (TGT_LEN - 1, BATCH, SRC_LEN)
    # attention rows must sum to 1 over the (masked) source positions
    assert jnp.allclose(jnp.sum(attns["std"], axis=-1), 1.0, atol=1e-4)

    print("KERNEL_OK")
</pallas_src>

<mosaic_0001>
module attributes {stable_mosaic.version = 11 : i64} {
  func.func @_nmt_kernel(%arg0: i32, %arg1: memref<2xi32, #tpu.memory_space<smem>>, %arg2: memref<30x1xi32, #tpu.memory_space<vmem>>, %arg3: memref<259x32xf32, #tpu.memory_space<vmem>>, %arg4: memref<14x128xf32, #tpu.memory_space<vmem>>, %arg5: memref<16x32xf32, #tpu.memory_space<vmem>>, %arg6: memref<14x32xf32, #tpu.memory_space<vmem>>) attributes {dimension_semantics = [#tpu.dimension_semantics<arbitrary>], iteration_bounds = array<i64: 1>, scalar_prefetch = 1 : i64, scratch_operands = 2 : i64, tpu.core_type = #tpu.core_type<tc>, window_params = [{pipeline_mode = #tpu.pipeline_mode<synchronous>, transform_indices = @transform_0, window_bounds = array<i64: 30, 1>}, {pipeline_mode = #tpu.pipeline_mode<synchronous>, transform_indices = @transform_1, window_bounds = array<i64: 259, 32>}, {pipeline_mode = #tpu.pipeline_mode<synchronous>, transform_indices = @transform_2, window_bounds = array<i64: 14, 128>}]} {
    %c0 = arith.constant 0 : index
    %c0_0 = arith.constant 0 : index
    %0 = vector.load %arg2[%c0, %c0_0] : memref<30x1xi32, #tpu.memory_space<vmem>>, vector<30x1xi32>
    %1 = tpu.iota {dimensions = array<i32: 1>} : vector<30x16xi32>
    %2 = vector.broadcast %0 : vector<30x1xi32> to vector<30x16xi32>
    %3 = arith.cmpi eq, %2, %1 : vector<30x16xi32>
    %4 = arith.extui %3 : vector<30x16xi1> to vector<30x16xi32>
    %5 = arith.sitofp %4 : vector<30x16xi32> to vector<30x16xf32>
    %6 = vector.extract_strided_slice %5 {offsets = [0, 0], sizes = [16, 16], strides = [1, 1]} : vector<30x16xf32> to vector<16x16xf32>
    %c0_1 = arith.constant 0 : index
    %c0_2 = arith.constant 0 : index
    %7 = vector.load %arg3[%c0_1, %c0_2] : memref<259x32xf32, #tpu.memory_space<vmem>>, vector<16x32xf32>
    %cst = arith.constant dense<0.000000e+00> : vector<16x32xf32>
    %8 = tpu.matmul %6, %7, %cst {dimension_numbers = #tpu.dot_dimension_numbers<[1], [0], [0], [1], [0, 0, 1, 1], [], []>} : vector<16x16xf32>, vector<16x32xf32>, vector<16x32xf32> -> vector<16x32xf32>
    %9 = vector.extract_strided_slice %5 {offsets = [16, 0], sizes = [14, 16], strides = [1, 1]} : vector<30x16xf32> to vector<14x16xf32>
    %c16 = arith.constant 16 : index
    %c0_3 = arith.constant 0 : index
    %10 = vector.load %arg3[%c16, %c0_3] : memref<259x32xf32, #tpu.memory_space<vmem>>, vector<16x32xf32>
    %cst_4 = arith.constant dense<0.000000e+00> : vector<14x32xf32>
    %11 = tpu.matmul %9, %10, %cst_4 {dimension_numbers = #tpu.dot_dimension_numbers<[1], [0], [0], [1], [0, 0, 1, 1], [], []>} : vector<14x16xf32>, vector<16x32xf32>, vector<14x32xf32> -> vector<14x32xf32>
    %c32 = arith.constant 32 : index
    %c0_5 = arith.constant 0 : index
    %12 = vector.load %arg3[%c32, %c0_5] : memref<259x32xf32, #tpu.memory_space<vmem>>, vector<32x32xf32>
    %cst_6 = arith.constant dense<0.000000e+00> : vector<16x32xf32>
    %13 = tpu.matmul %8, %12, %cst_6 {dimension_numbers = #tpu.dot_dimension_numbers<[1], [0], [0], [1], [0, 0, 1, 1], [], []>} : vector<16x32xf32>, vector<32x32xf32>, vector<16x32xf32> -> vector<16x32xf32>
    %c256 = arith.constant 256 : index
    %c0_7 = arith.constant 0 : index
    %14 = vector.load %arg3[%c256, %c0_7] : memref<259x32xf32, #tpu.memory_space<vmem>>, vector<1x32xf32>
    %15 = vector.broadcast %14 : vector<1x32xf32> to vector<16x32xf32>
    %16 = arith.addf %13, %15 : vector<16x32xf32>
    %c96 = arith.constant 96 : index
    %c0_8 = arith.constant 0 : index
    %17 = vector.load %arg3[%c96, %c0_8] : memref<259x32xf32, #tpu.memory_space<vmem>>, vector<32x32xf32>
    %cst_9 = arith.constant dense<0.000000e+00> : vector<14x32xf32>
    %18 = tpu.matmul %11, %17, %cst_9 {dimension_numbers = #tpu.dot_dimension_numbers<[1], [0], [0], [1], [0, 0, 1, 1], [], []>} : vector<14x32xf32>, vector<32x32xf32>, vector<14x32xf32> -> vector<14x32xf32>
    %c257 = arith.constant 257 : index
    %c0_10 = arith.constant 0 : index
    %19 = vector.load %arg3[%c257, %c0_10] : memref<259x32xf32, #tpu.memory_space<vmem>>, vector<1x32xf32>
    %20 = vector.broadcast %19 : vector<1x32xf32> to vector<14x32xf32>
    %21 = arith.addf %18, %20 : vector<14x32xf32>
    %22 = tpu.iota {dimensions = array<i32: 0>} : vector<2x1xi32>
    %c0_i32 = arith.constant 0 : i32
    %23 = vector.broadcast %c0_i32 : i32 to vector<2x1xi32>
    %c0_i32_11 = arith.constant 0 : i32
    %24 = vector.broadcast %c0_i32_11 : i32 to vector<2x1xi32>
    %25 = arith.cmpi eq, %22, %24 : vector<2x1xi32>
    %c0_12 = arith.constant 0 : index
    %26 = memref.load %arg1[%c0_12] : memref<2xi32, #tpu.memory_space<smem>>
    %27 = vector.broadcast %26 : i32 to vector<2x1xi32>
    %28 = arith.select %25, %27, %23 : vector<2x1xi1>, vector<2x1xi32>
    %c1_i32 = arith.constant 1 : i32
    %29 = vector.broadcast %c1_i32 : i32 to vector<2x1xi32>
    %30 = arith.cmpi eq, %22, %29 : vector<2x1xi32>
    %c1 = arith.constant 1 : index
    %31 = memref.load %arg1[%c1] : memref<2xi32, #tpu.memory_space<smem>>
    %32 = vector.broadcast %31 : i32 to vector<2x1xi32>
    %33 = arith.select %30, %32, %28 : vector<2x1xi1>, vector<2x1xi32>
    %c64 = arith.constant 64 : index
    %c0_13 = arith.constant 0 : index
    %34 = vector.load %arg3[%c64, %c0_13] : memref<259x32xf32, #tpu.memory_space<vmem>>, vector<32x32xf32>
    %cst_14 = arith.constant 0.000000e+00 : f32
    %35 = vector.broadcast %cst_14 : f32 to vector<2x32xf32>
    %36 = vector.extract_strided_slice %16 {offsets = [0, 0], sizes = [2, 32], strides = [1, 1]} : vector<16x32xf32> to vector<2x32xf32>
    %cst_15 = arith.constant dense<0.000000e+00> : vector<2x32xf32>
    %37 = tpu.matmul %35, %34, %cst_15 {dimension_numbers = #tpu.dot_dimension_numbers<[1], [0], [0], [1], [0, 0, 1, 1], [], []>} : vector<2x32xf32>, vector<32x32xf32>, vector<2x32xf32> -> vector<2x32xf32>
    %38 = arith.addf %36, %37 : vector<2x32xf32>
    %39 = math.tanh %38 : vector<2x32xf32>
    %c0_i32_16 = arith.constant 0 : i32
    %40 = vector.broadcast %c0_i32_16 : i32 to vector<2x1xi32>
    %41 = arith.cmpi sgt, %33, %40 : vector<2x1xi32>
    %42 = vector.shape_cast %41 : vector<2x1xi1> to vector<2x1xi1>
    %43 = vector.broadcast %42 : vector<2x1xi1> to vector<2x32xi1>
    %44 = arith.select %43, %39, %35 : vector<2x32xi1>, vector<2x32xf32>
    %c0_17 = arith.constant 0 : index
    %c0_18 = arith.constant 0 : index
    %45 = vector.load %arg5[%c0_17, %c0_18] : memref<16x32xf32, #tpu.memory_space<vmem>>, vector<2x32xf32>
    tpu.vector_store %arg5[%c0_17, %c0_18], %44 {strides = array<i32>} : memref<16x32xf32, #tpu.memory_space<vmem>>, vector<2x32xf32>,
    %46 = vector.extract_strided_slice %16 {offsets = [2, 0], sizes = [2, 32], strides = [1, 1]} : vector<16x32xf32> to vector<2x32xf32>
    %cst_19 = arith.constant dense<0.000000e+00> : vector<2x32xf32>
    %47 = tpu.matmul %44, %34, %cst_19 {dimension_numbers = #tpu.dot_dimension_numbers<[1], [0], [0], [1], [0, 0, 1, 1], [], []>} : vector<2x32xf32>, vector<32x32xf32>, vector<2x32xf32> -> vector<2x32xf32>
    %48 = arith.addf %46, %47 : vector<2x32xf32>
    %49 = math.tanh %48 : vector<2x32xf32>
    %c1_i32_20 = arith.constant 1 : i32
    %50 = vector.broadcast %c1_i32_20 : i32 to vector<2x1xi32>
    %51 = arith.cmpi sgt, %33, %50 : vector<2x1xi32>
    %52 = vector.shape_cast %51 : vector<2x1xi1> to vector<2x1xi1>
    %53 = vector.broadcast %52 : vector<2x1xi1> to vector<2x32xi1>
    %54 = arith.select %53, %49, %44 : vector<2x32xi1>, vector<2x32xf32>
    %c2 = arith.constant 2 : index
    %c0_21 = arith.constant 0 : index
    %55 = vector.load %arg5[%c2, %c0_21] : memref<16x32xf32, #tpu.memory_space<vmem>>, vector<2x32xf32>
    tpu.vector_store %arg5[%c2, %c0_21], %54 {strides = array<i32>} : memref<16x32xf32, #tpu.memory_space<vmem>>, vector<2x32xf32>,
    %56 = vector.extract_strided_slice %16 {offsets = [4, 0], sizes = [2, 32], strides = [1, 1]} : vector<16x32xf32> to vector<2x32xf32>
    %cst_22 = arith.constant dense<0.000000e+00> : vector<2x32xf32>
    %57 = tpu.matmul %54, %34, %cst_22 {dimension_numbers = #tpu.dot_dimension_numbers<[1], [0], [0], [1], [0, 0, 1, 1], [], []>} : vector<2x32xf32>, vector<32x32xf32>, vector<2x32xf32> -> vector<2x32xf32>
    %58 = arith.addf %56, %57 : vector<2x32xf32>
    %59 = math.tanh %58 : vector<2x32xf32>
    %c2_i32 = arith.constant 2 : i32
    %60 = vector.broadcast %c2_i32 : i32 to vector<2x1xi32>
    %61 = arith.cmpi sgt, %33, %60 : vector<2x1xi32>
    %62 = vector.shape_cast %61 : vector<2x1xi1> to vector<2x1xi1>
    %63 = vector.broadcast %62 : vector<2x1xi1> to vector<2x32xi1>
    %64 = arith.select %63, %59, %54 : vector<2x32xi1>, vector<2x32xf32>
    %c4 = arith.constant 4 : index
    %c0_23 = arith.constant 0 : index
    %65 = vector.load %arg5[%c4, %c0_23] : memref<16x32xf32, #tpu.memory_space<vmem>>, vector<2x32xf32>
    tpu.vector_store %arg5[%c4, %c0_23], %64 {strides = array<i32>} : memref<16x32xf32, #tpu.memory_space<vmem>>, vector<2x32xf32>,
    %66 = vector.extract_strided_slice %16 {offsets = [6, 0], sizes = [2, 32], strides = [1, 1]} : vector<16x32xf32> to vector<2x32xf32>
    %cst_24 = arith.constant dense<0.000000e+00> : vector<2x32xf32>
    %67 = tpu.matmul %64, %34, %cst_24 {dimension_numbers = #tpu.dot_dimension_numbers<[1], [0], [0], [1], [0, 0, 1, 1], [], []>} : vector<2x32xf32>, vector<32x32xf32>, vector<2x32xf32> -> vector<2x32xf32>
    %68 = arith.addf %66, %67 : vector<2x32xf32>
    %69 = math.tanh %68 : vector<2x32xf32>
    %c3_i32 = arith.constant 3 : i32
    %70 = vector.broadcast %c3_i32 : i32 to vector<2x1xi32>
    %71 = arith.cmpi sgt, %33, %70 : vector<2x1xi32>
    %72 = vector.shape_cast %71 : vector<2x1xi1> to vector<2x1xi1>
    %73 = vector.broadcast %72 : vector<2x1xi1> to vector<2x32xi1>
    %74 = arith.select %73, %69, %64 : vector<2x32xi1>, vector<2x32xf32>
    %c6 = arith.constant 6 : index
    %c0_25 = arith.constant 0 : index
    %75 = vector.load %arg5[%c6, %c0_25] : memref<16x32xf32, #tpu.memory_space<vmem>>, vector<2x32xf32>
    tpu.vector_store %arg5[%c6, %c0_25], %74 {strides = array<i32>} : memref<16x32xf32, #tpu.memory_space<vmem>>, vector<2x32xf32>,
    %76 = vector.extract_strided_slice %16 {offsets = [8, 0], sizes = [2, 32], strides = [1, 1]} : vector<16x32xf32> to vector<2x32xf32>
    %cst_26 = arith.constant dense<0.000000e+00> : vector<2x32xf32>
    %77 = tpu.matmul %74, %34, %cst_26 {dimension_numbers = #tpu.dot_dimension_numbers<[1], [0], [0], [1], [0, 0, 1, 1], [], []>} : vector<2x32xf32>, vector<32x32xf32>, vector<2x32xf32> -> vector<2x32xf32>
    %78 = arith.addf %76, %77 : vector<2x32xf32>
    %79 = math.tanh %78 : vector<2x32xf32>
    %c4_i32 = arith.constant 4 : i32
    %80 = vector.broadcast %c4_i32 : i32 to vector<2x1xi32>
    %81 = arith.cmpi sgt, %33, %80 : vector<2x1xi32>
    %82 = vector.shape_cast %81 : vector<2x1xi1> to vector<2x1xi1>
    %83 = vector.broadcast %82 : vector<2x1xi1> to vector<2x32xi1>
    %84 = arith.select %83, %79, %74 : vector<2x32xi1>, vector<2x32xf32>
    %c8 = arith.constant 8 : index
    %c0_27 = arith.constant 0 : index
    %85 = vector.load %arg5[%c8, %c0_27] : memref<16x32xf32, #tpu.memory_space<vmem>>, vector<2x32xf32>
    tpu.vector_store %arg5[%c8, %c0_27], %84 {strides = array<i32>} : memref<16x32xf32, #tpu.memory_space<vmem>>, vector<2x32xf32>,
    %86 = vector.extract_strided_slice %16 {offsets = [10, 0], sizes = [2, 32], strides = [1, 1]} : vector<16x32xf32> to vector<2x32xf32>
    %cst_28 = arith.constant dense<0.000000e+00> : vector<2x32xf32>
    %87 = tpu.matmul %84, %34, %cst_28 {dimension_numbers = #tpu.dot_dimension_numbers<[1], [0], [0], [1], [0, 0, 1, 1], [], []>} : vector<2x32xf32>, vector<32x32xf32>, vector<2x32xf32> -> vector<2x32xf32>
    %88 = arith.addf %86, %87 : vector<2x32xf32>
    %89 = math.tanh %88 : vector<2x32xf32>
    %c5_i32 = arith.constant 5 : i32
    %90 = vector.broadcast %c5_i32 : i32 to vector<2x1xi32>
    %91 = arith.cmpi sgt, %33, %90 : vector<2x1xi32>
    %92 = vector.shape_cast %91 : vector<2x1xi1> to vector<2x1xi1>
    %93 = vector.broadcast %92 : vector<2x1xi1> to vector<2x32xi1>
    %94 = arith.select %93, %89, %84 : vector<2x32xi1>, vector<2x32xf32>
    %c10 = arith.constant 10 : index
    %c0_29 = arith.constant 0 : index
    %95 = vector.load %arg5[%c10, %c0_29] : memref<16x32xf32, #tpu.memory_space<vmem>>, vector<2x32xf32>
    tpu.vector_store %arg5[%c10, %c0_29], %94 {strides = array<i32>} : memref<16x32xf32, #tpu.memory_space<vmem>>, vector<2x32xf32>,
    %96 = vector.extract_strided_slice %16 {offsets = [12, 0], sizes = [2, 32], strides = [1, 1]} : vector<16x32xf32> to vector<2x32xf32>
    %cst_30 = arith.constant dense<0.000000e+00> : vector<2x32xf32>
    %97 = tpu.matmul %94, %34, %cst_30 {dimension_numbers = #tpu.dot_dimension_numbers<[1], [0], [0], [1], [0, 0, 1, 1], [], []>} : vector<2x32xf32>, vector<32x32xf32>, vector<2x32xf32> -> vector<2x32xf32>
    %98 = arith.addf %96, %97 : vector<2x32xf32>
    %99 = math.tanh %98 : vector<2x32xf32>
    %c6_i32 = arith.constant 6 : i32
    %100 = vector.broadcast %c6_i32 : i32 to vector<2x1xi32>
    %101 = arith.cmpi sgt, %33, %100 : vector<2x1xi32>
    %102 = vector.shape_cast %101 : vector<2x1xi1> to vector<2x1xi1>
    %103 = vector.broadcast %102 : vector<2x1xi1> to vector<2x32xi1>
    %104 = arith.select %103, %99, %94 : vector<2x32xi1>, vector<2x32xf32>
    %c12 = arith.constant 12 : index
    %c0_31 = arith.constant 0 : index
    %105 = vector.load %arg5[%c12, %c0_31] : memref<16x32xf32, #tpu.memory_space<vmem>>, vector<2x32xf32>
    tpu.vector_store %arg5[%c12, %c0_31], %104 {strides = array<i32>} : memref<16x32xf32, #tpu.memory_space<vmem>>, vector<2x32xf32>,
    %106 = vector.extract_strided_slice %16 {offsets = [14, 0], sizes = [2, 32], strides = [1, 1]} : vector<16x32xf32> to vector<2x32xf32>
    %cst_32 = arith.constant dense<0.000000e+00> : vector<2x32xf32>
    %107 = tpu.matmul %104, %34, %cst_32 {dimension_numbers = #tpu.dot_dimension_numbers<[1], [0], [0], [1], [0, 0, 1, 1], [], []>} : vector<2x32xf32>, vector<32x32xf32>, vector<2x32xf32> -> vector<2x32xf32>
    %108 = arith.addf %106, %107 : vector<2x32xf32>
    %109 = math.tanh %108 : vector<2x32xf32>
    %c7_i32 = arith.constant 7 : i32
    %110 = vector.broadcast %c7_i32 : i32 to vector<2x1xi32>
    %111 = arith.cmpi sgt, %33, %110 : vector<2x1xi32>
    %112 = vector.shape_cast %111 : vector<2x1xi1> to vector<2x1xi1>
    %113 = vector.broadcast %112 : vector<2x1xi1> to vector<2x32xi1>
    %114 = arith.select %113, %109, %104 : vector<2x32xi1>, vector<2x32xf32>
    %c14 = arith.constant 14 : index
    %c0_33 = arith.constant 0 : index
    %115 = vector.load %arg5[%c14, %c0_33] : memref<16x32xf32, #tpu.memory_space<vmem>>, vector<2x32xf32>
    tpu.vector_store %arg5[%c14, %c0_33], %114 {strides = array<i32>} : memref<16x32xf32, #tpu.memory_space<vmem>>, vector<2x32xf32>,
    %c128 = arith.constant 128 : index
    %c0_34 = arith.constant 0 : index
    %116 = vector.load %arg3[%c128, %c0_34] : memref<259x32xf32, #tpu.memory_space<vmem>>, vector<32x32xf32>
    %117 = vector.extract_strided_slice %21 {offsets = [0, 0], sizes = [2, 32], strides = [1, 1]} : vector<14x32xf32> to vector<2x32xf32>
    %cst_35 = arith.constant dense<0.000000e+00> : vector<2x32xf32>
    %118 = tpu.matmul %114, %116, %cst_35 {dimension_numbers = #tpu.dot_dimension_numbers<[1], [0], [0], [1], [0, 0, 1, 1], [], []>} : vector<2x32xf32>, vector<32x32xf32>, vector<2x32xf32> -> vector<2x32xf32>
    %119 = arith.addf %117, %118 : vector<2x32xf32>
    %120 = math.tanh %119 : vector<2x32xf32>
    %c0_36 = arith.constant 0 : index
    %c0_37 = arith.constant 0 : index
    %121 = vector.load %arg6[%c0_36, %c0_37] : memref<14x32xf32, #tpu.memory_space<vmem>>, vector<2x32xf32>
    tpu.vector_store %arg6[%c0_36, %c0_37], %120 {strides = array<i32>} : memref<14x32xf32, #tpu.memory_space<vmem>>, vector<2x32xf32>,
    %122 = vector.extract_strided_slice %21 {offsets = [2, 0], sizes = [2, 32], strides = [1, 1]} : vector<14x32xf32> to vector<2x32xf32>
    %cst_38 = arith.constant dense<0.000000e+00> : vector<2x32xf32>
    %123 = tpu.matmul %120, %116, %cst_38 {dimension_numbers = #tpu.dot_dimension_numbers<[1], [0], [0], [1], [0, 0, 1, 1], [], []>} : vector<2x32xf32>, vector<32x32xf32>, vector<2x32xf32> -> vector<2x32xf32>
    %124 = arith.addf %122, %123 : vector<2x32xf32>
    %125 = math.tanh %124 : vector<2x32xf32>
    %c2_39 = arith.constant 2 : index
    %c0_40 = arith.constant 0 : index
    %126 = vector.load %arg6[%c2_39, %c0_40] : memref<14x32xf32, #tpu.memory_space<vmem>>, vector<2x32xf32>
    tpu.vector_store %arg6[%c2_39, %c0_40], %125 {strides = array<i32>} : memref<14x32xf32, #tpu.memory_space<vmem>>, vector<2x32xf32>,
    %127 = vector.extract_strided_slice %21 {offsets = [4, 0], sizes = [2, 32], strides = [1, 1]} : vector<14x32xf32> to vector<2x32xf32>
    %cst_41 = arith.constant dense<0.000000e+00> : vector<2x32xf32>
    %128 = tpu.matmul %125, %116, %cst_41 {dimension_numbers = #tpu.dot_dimension_numbers<[1], [0], [0], [1], [0, 0, 1, 1], [], []>} : vector<2x32xf32>, vector<32x32xf32>, vector<2x32xf32> -> vector<2x32xf32>
    %129 = arith.addf %127, %128 : vector<2x32xf32>
    %130 = math.tanh %129 : vector<2x32xf32>
    %c4_42 = arith.constant 4 : index
    %c0_43 = arith.constant 0 : index
    %131 = vector.load %arg6[%c4_42, %c0_43] : memref<14x32xf32, #tpu.memory_space<vmem>>, vector<2x32xf32>
    tpu.vector_store %arg6[%c4_42, %c0_43], %130 {strides = array<i32>} : memref<14x32xf32, #tpu.memory_space<vmem>>, vector<2x32xf32>,
    %132 = vector.extract_strided_slice %21 {offsets = [6, 0], sizes = [2, 32], strides = [1, 1]} : vector<14x32xf32> to vector<2x32xf32>
    %cst_44 = arith.constant dense<0.000000e+00> : vector<2x32xf32>
    %133 = tpu.matmul %130, %116, %cst_44 {dimension_numbers = #tpu.dot_dimension_numbers<[1], [0], [0], [1], [0, 0, 1, 1], [], []>} : vector<2x32xf32>, vector<32x32xf32>, vector<2x32xf32> -> vector<2x32xf32>
    %134 = arith.addf %132, %133 : vector<2x32xf32>
    %135 = math.tanh %134 : vector<2x32xf32>
    %c6_45 = arith.constant 6 : index
    %c0_46 = arith.constant 0 : index
    %136 = vector.load %arg6[%c6_45, %c0_46] : memref<14x32xf32, #tpu.memory_space<vmem>>, vector<2x32xf32>
    tpu.vector_store %arg6[%c6_45, %c0_46], %135 {strides = array<i32>} : memref<14x32xf32, #tpu.memory_space<vmem>>, vector<2x32xf32>,
    %137 = vector.extract_strided_slice %21 {offsets = [8, 0], sizes = [2, 32], strides = [1, 1]} : vector<14x32xf32> to vector<2x32xf32>
    %cst_47 = arith.constant dense<0.000000e+00> : vector<2x32xf32>
    %138 = tpu.matmul %135, %116, %cst_47 {dimension_numbers = #tpu.dot_dimension_numbers<[1], [0], [0], [1], [0, 0, 1, 1], [], []>} : vector<2x32xf32>, vector<32x32xf32>, vector<2x32xf32> -> vector<2x32xf32>
    %139 = arith.addf %137, %138 : vector<2x32xf32>
    %140 = math.tanh %139 : vector<2x32xf32>
    %c8_48 = arith.constant 8 : index
    %c0_49 = arith.constant 0 : index
    %141 = vector.load %arg6[%c8_48, %c0_49] : memref<14x32xf32, #tpu.memory_space<vmem>>, vector<2x32xf32>
    tpu.vector_store %arg6[%c8_48, %c0_49], %140 {strides = array<i32>} : memref<14x32xf32, #tpu.memory_space<vmem>>, vector<2x32xf32>,
    %142 = vector.extract_strided_slice %21 {offsets = [10, 0], sizes = [2, 32], strides = [1, 1]} : vector<14x32xf32> to vector<2x32xf32>
    %cst_50 = arith.constant dense<0.000000e+00> : vector<2x32xf32>
    %143 = tpu.matmul %140, %116, %cst_50 {dimension_numbers = #tpu.dot_dimension_numbers<[1], [0], [0], [1], [0, 0, 1, 1], [], []>} : vector<2x32xf32>, vector<32x32xf32>, vector<2x32xf32> -> vector<2x32xf32>
    %144 = arith.addf %142, %143 : vector<2x32xf32>
    %145 = math.tanh %144 : vector<2x32xf32>
    %c10_51 = arith.constant 10 : index
    %c0_52 = arith.constant 0 : index
    %146 = vector.load %arg6[%c10_51, %c0_52] : memref<14x32xf32, #tpu.memory_space<vmem>>, vector<2x32xf32>
    tpu.vector_store %arg6[%c10_51, %c0_52], %145 {strides = array<i32>} : memref<14x32xf32, #tpu.memory_space<vmem>>, vector<2x32xf32>,
    %147 = vector.extract_strided_slice %21 {offsets = [12, 0], sizes = [2, 32], strides = [1, 1]} : vector<14x32xf32> to vector<2x32xf32>
    %cst_53 = arith.constant dense<0.000000e+00> : vector<2x32xf32>
    %148 = tpu.matmul %145, %116, %cst_53 {dimension_numbers = #tpu.dot_dimension_numbers<[1], [0], [0], [1], [0, 0, 1, 1], [], []>} : vector<2x32xf32>, vector<32x32xf32>, vector<2x32xf32> -> vector<2x32xf32>
    %149 = arith.addf %147, %148 : vector<2x32xf32>
    %150 = math.tanh %149 : vector<2x32xf32>
    %c12_54 = arith.constant 12 : index
    %c0_55 = arith.constant 0 : index
    %151 = vector.load %arg6[%c12_54, %c0_55] : memref<14x32xf32, #tpu.memory_space<vmem>>, vector<2x32xf32>
    tpu.vector_store %arg6[%c12_54, %c0_55], %150 {strides = array<i32>} : memref<14x32xf32, #tpu.memory_space<vmem>>, vector<2x32xf32>,
    %c0_56 = arith.constant 0 : index
    %c0_57 = arith.constant 0 : index
    %152 = tpu.strided_load %arg5[%c0_56, %c0_57] {strides = array<i32: 2, 1>} : memref<16x32xf32, #tpu.memory_space<vmem>>, vector<8x32xf32>
    %c1_58 = arith.constant 1 : index
    %c0_59 = arith.constant 0 : index
    %153 = tpu.strided_load %arg5[%c1_58, %c0_59] {strides = array<i32: 2, 1>} : memref<16x32xf32, #tpu.memory_space<vmem>>, vector<8x32xf32>
    %154 = tpu.concatenate %152, %153 in 0 : vector<8x32xf32>, vector<8x32xf32> -> vector<16x32xf32>
    %c0_60 = arith.constant 0 : index
    %c0_61 = arith.constant 0 : index
    %155 = tpu.strided_load %arg6[%c0_60, %c0_61] {strides = array<i32: 2, 1>} : memref<14x32xf32, #tpu.memory_space<vmem>>, vector<7x32xf32>
    %c1_62 = arith.constant 1 : index
    %c0_63 = arith.constant 0 : index
    %156 = tpu.strided_load %arg6[%c1_62, %c0_63] {strides = array<i32: 2, 1>} : memref<14x32xf32, #tpu.memory_space<vmem>>, vector<7x32xf32>
    %157 = tpu.concatenate %155, %156 in 0 : vector<7x32xf32>, vector<7x32xf32> -> vector<14x32xf32>
    %c160 = arith.constant 160 : index
    %c0_64 = arith.constant 0 : index
    %158 = vector.load %arg3[%c160, %c0_64] : memref<259x32xf32, #tpu.memory_space<vmem>>, vector<32x32xf32>
    %cst_65 = arith.constant dense<0.000000e+00> : vector<14x32xf32>
    %159 = tpu.matmul %157, %158, %cst_65 {dimension_numbers = #tpu.dot_dimension_numbers<[1], [0], [0], [1], [0, 0, 1, 1], [], []>} : vector<14x32xf32>, vector<32x32xf32>, vector<14x32xf32> -> vector<14x32xf32>
    %c224 = arith.constant 224 : index
    %c0_66 = arith.constant 0 : index
    %160 = vector.load %arg3[%c224, %c0_66] : memref<259x32xf32, #tpu.memory_space<vmem>>, vector<32x32xf32>
    %cst_67 = arith.constant dense<0.000000e+00> : vector<14x32xf32>
    %161 = tpu.matmul %157, %160, %cst_67 {dimension_numbers = #tpu.dot_dimension_numbers<[1], [0], [0], [1], [0, 0, 1, 1], [], []>} : vector<14x32xf32>, vector<32x32xf32>, vector<14x32xf32> -> vector<14x32xf32>
    %162 = tpu.iota {dimensions = array<i32: 1>} : vector<7x8xi32>
    %163 = vector.extract_strided_slice %154 {offsets = [0, 0], sizes = [8, 32], strides = [1, 1]} : vector<16x32xf32> to vector<8x32xf32>
    %164 = vector.extract_strided_slice %159 {offsets = [0, 0], sizes = [7, 32], strides = [1, 1]} : vector<14x32xf32> to vector<7x32xf32>
    %165 = tpu.transpose %163, [1, 0] : vector<8x32xf32> -> vector<32x8xf32>
    %cst_68 = arith.constant dense<0.000000e+00> : vector<7x8xf32>
    %166 = tpu.matmul %164, %165, %cst_68 {dimension_numbers = #tpu.dot_dimension_numbers<[1], [0], [0], [1], [0, 0, 1, 1], [], []>} : vector<7x32xf32>, vector<32x8xf32>, vector<7x8xf32> -> vector<7x8xf32>
    %c0_69 = arith.constant 0 : index
    %167 = memref.load %arg1[%c0_69] : memref<2xi32, #tpu.memory_space<smem>>
    %168 = vector.broadcast %167 : i32 to vector<7x8xi32>
    %169 = arith.cmpi slt, %162, %168 : vector<7x8xi32>
    %cst_70 = arith.constant -1.000000e+30 : f32
    %170 = vector.broadcast %cst_70 : f32 to vector<7x8xf32>
    %171 = arith.select %169, %166, %170 : vector<7x8xi1>, vector<7x8xf32>
    %cst_71 = arith.constant dense<0xFF800000> : vector<7xf32>
    %172 = vector.multi_reduction <maximumf>, %171, %cst_71 [1] : vector<7x8xf32> to vector<7xf32>
    %173 = vector.shape_cast %172 : vector<7xf32> to vector<7x1xf32>
    %174 = vector.broadcast %173 : vector<7x1xf32> to vector<7x8xf32>
    %175 = arith.subf %171, %174 : vector<7x8xf32>
    %176 = math.exp %175 : vector<7x8xf32>
    %cst_72 = arith.constant dense<0.000000e+00> : vector<7xf32>
    %177 = vector.multi_reduction <add>, %176, %cst_72 [1] : vector<7x8xf32> to vector<7xf32>
    %178 = vector.shape_cast %177 : vector<7xf32> to vector<7x1xf32>
    %179 = vector.broadcast %178 : vector<7x1xf32> to vector<7x8xf32>
    %180 = arith.divf %176, %179 : vector<7x8xf32>
    %cst_73 = arith.constant dense<0.000000e+00> : vector<7x32xf32>
    %181 = tpu.matmul %180, %163, %cst_73 {dimension_numbers = #tpu.dot_dimension_numbers<[1], [0], [0], [1], [0, 0, 1, 1], [], []>} : vector<7x8xf32>, vector<8x32xf32>, vector<7x32xf32> -> vector<7x32xf32>
    %182 = vector.extract_strided_slice %154 {offsets = [8, 0], sizes = [8, 32], strides = [1, 1]} : vector<16x32xf32> to vector<8x32xf32>
    %183 = vector.extract_strided_slice %159 {offsets = [7, 0], sizes = [7, 32], strides = [1, 1]} : vector<14x32xf32> to vector<7x32xf32>
    %184 = tpu.transpose %182, [1, 0] : vector<8x32xf32> -> vector<32x8xf32>
    %cst_74 = arith.constant dense<0.000000e+00> : vector<7x8xf32>
    %185 = tpu.matmul %183, %184, %cst_74 {dimension_numbers = #tpu.dot_dimension_numbers<[1], [0], [0], [1], [0, 0, 1, 1], [], []>} : vector<7x32xf32>, vector<32x8xf32>, vector<7x8xf32> -> vector<7x8xf32>
    %c1_75 = arith.constant 1 : index
    %186 = memref.load %arg1[%c1_75] : memref<2xi32, #tpu.memory_space<smem>>
    %187 = vector.broadcast %186 : i32 to vector<7x8xi32>
    %188 = arith.cmpi slt, %162, %187 : vector<7x8xi32>
    %cst_76 = arith.constant -1.000000e+30 : f32
    %189 = vector.broadcast %cst_76 : f32 to vector<7x8xf32>
    %190 = arith.select %188, %185, %189 : vector<7x8xi1>, vector<7x8xf32>
    %cst_77 = arith.constant dense<0xFF800000> : vector<7xf32>
    %191 = vector.multi_reduction <maximumf>, %190, %cst_77 [1] : vector<7x8xf32> to vector<7xf32>
    %192 = vector.shape_cast %191 : vector<7xf32> to vector<7x1xf32>
    %193 = vector.broadcast %192 : vector<7x1xf32> to vector<7x8xf32>
    %194 = arith.subf %190, %193 : vector<7x8xf32>
    %195 = math.exp %194 : vector<7x8xf32>
    %cst_78 = arith.constant dense<0.000000e+00> : vector<7xf32>
    %196 = vector.multi_reduction <add>, %195, %cst_78 [1] : vector<7x8xf32> to vector<7xf32>
    %197 = vector.shape_cast %196 : vector<7xf32> to vector<7x1xf32>
    %198 = vector.broadcast %197 : vector<7x1xf32> to vector<7x8xf32>
    %199 = arith.divf %195, %198 : vector<7x8xf32>
    %cst_79 = arith.constant dense<0.000000e+00> : vector<7x32xf32>
    %200 = tpu.matmul %199, %182, %cst_79 {dimension_numbers = #tpu.dot_dimension_numbers<[1], [0], [0], [1], [0, 0, 1, 1], [], []>} : vector<7x8xf32>, vector<8x32xf32>, vector<7x32xf32> -> vector<7x32xf32>
    %201 = tpu.concatenate %181, %200 in 0 : vector<7x32xf32>, vector<7x32xf32> -> vector<14x32xf32>
    %202 = tpu.concatenate %180, %199 in 0 : vector<7x8xf32>, vector<7x8xf32> -> vector<14x8xf32>
    %c192 = arith.constant 192 : index
    %c0_80 = arith.constant 0 : index
    %203 = vector.load %arg3[%c192, %c0_80] : memref<259x32xf32, #tpu.memory_space<vmem>>, vector<32x32xf32>
    %cst_81 = arith.constant dense<0.000000e+00> : vector<14x32xf32>
    %204 = tpu.matmul %201, %203, %cst_81 {dimension_numbers = #tpu.dot_dimension_numbers<[1], [0], [0], [1], [0, 0, 1, 1], [], []>} : vector<14x32xf32>, vector<32x32xf32>, vector<14x32xf32> -> vector<14x32xf32>
    %205 = arith.addf %204, %161 : vector<14x32xf32>
    %c258 = arith.constant 258 : index
    %c0_82 = arith.constant 0 : index
    %206 = vector.load %arg3[%c258, %c0_82] : memref<259x32xf32, #tpu.memory_space<vmem>>, vector<1x32xf32>
    %207 = vector.broadcast %206 : vector<1x32xf32> to vector<14x32xf32>
    %208 = arith.addf %205, %207 : vector<14x32xf32>
    %209 = math.tanh %208 : vector<14x32xf32>
    %cst_83 = arith.constant 0.000000e+00 : f32
    %210 = vector.broadcast %cst_83 : f32 to vector<14x128xf32>
    %c0_84 = arith.constant 0 : index
    %c0_85 = arith.constant 0 : index
    %211 = vector.load %arg4[%c0_84, %c0_85] : memref<14x128xf32, #tpu.memory_space<vmem>>, vector<14x128xf32>
    tpu.vector_store %arg4[%c0_84, %c0_85], %210 {strides = array<i32>} : memref<14x128xf32, #tpu.memory_space<vmem>>, vector<14x128xf32>,
    %c0_86 = arith.constant 0 : index
    %c0_87 = arith.constant 0 : index
    %212 = vector.load %arg4[%c0_86, %c0_87] : memref<14x128xf32, #tpu.memory_space<vmem>>, vector<14x32xf32>
    tpu.vector_store %arg4[%c0_86, %c0_87], %209 {strides = array<i32>} : memref<14x128xf32, #tpu.memory_space<vmem>>, vector<14x32xf32>,
    %c0_88 = arith.constant 0 : index
    %c32_89 = arith.constant 32 : index
    %213 = vector.load %arg4[%c0_88, %c32_89] : memref<14x128xf32, #tpu.memory_space<vmem>>, vector<14x8xf32>
    tpu.vector_store %arg4[%c0_88, %c32_89], %202 {strides = array<i32>} : memref<14x128xf32, #tpu.memory_space<vmem>>, vector<14x8xf32>,
    return
  }
  func.func @transform_0(%arg0: i32, %arg1: memref<2xi32, #tpu.memory_space<smem>>) -> (i32, i32) {
    %c0_i32 = arith.constant 0 : i32
    %c0_i32_0 = arith.constant 0 : i32
    %c0_i32_1 = arith.constant 0 : i32
    return %c0_i32, %c0_i32_0 : i32, i32
  }
  func.func @transform_1(%arg0: i32, %arg1: memref<2xi32, #tpu.memory_space<smem>>) -> (i32, i32) {
    %c0_i32 = arith.constant 0 : i32
    %c0_i32_0 = arith.constant 0 : i32
    %c0_i32_1 = arith.constant 0 : i32
    return %c0_i32, %c0_i32_0 : i32, i32
  }
  func.func @transform_2(%arg0: i32, %arg1: memref<2xi32, #tpu.memory_space<smem>>) -> (i32, i32) {
    %c0_i32 = arith.constant 0 : i32
    %c0_i32_0 = arith.constant 0 : i32
    %c0_i32_1 = arith.constant 0 : i32
    return %c0_i32, %c0_i32_0 : i32, i32
  }
}

</mosaic_0001>

<bundles_post_ra>
// kernel: nmt_forward.1
= control target key start
LH: loop header
LB: loop body
LE: loop exit
PB: predicated region body
PF: predicated region fallthrough
CT: control target
= control target key end

     0   :  { %s1087_s15 = smov [#allocation5]   ;;  %s1358_s0 = inlined_call_operand.vmem [shape: s32[2], index: 0, kind: input, shape index: {}]   ;;  %s1359_s1 = inlined_call_operand.vmem [shape: s32[30,1], index: 1, kind: input, shape index: {}]   ;;  %s1360_s2 = inlined_call_operand.vmem [shape: f32[259,32], index: 2, kind: input, shape index: {}]   ;;  %s1361_s3 = inlined_call_operand.vmem [shape: f32[14,128], index: 3, kind: output, shape index: {}]  }
   0x1   :  { %s9_s14 = sshll.u32 %s1358_s0, 4  ;;  %s10_s14 = int_to_ptr.vmem [resolvable:$true] %s9_s14 }
   0x2   :  { %12 = dma.vmem_to_smem %s10_s14, 16, %s1087_s15, [#allocation4] }
   0x3   :  { %1085 = dma.done.wait [#allocation4], 16 }
   0x4   :  { %1086 = vsyncadd [#allocation4], 4294967280 }
   0x5   :  { %15 = sfence }
   0x6   :  { %v20_v0 = vld [vmem:[%s1359_s1] sm:$0xff]  ;;  %v51_v1 = vld [vmem:[%s1360_s2 + $0x8] sm:$0xff]  ;;  %v1088_v2 = vmov 0   ;;  %v1089_v3 = vmov 0.0   ;;  %v22_v4 = vld [vmem:[%s1359_s1 + $0x10] sm:$0xff]  ;;  %v24_v10 = vlaneseq  ;;  %vm52_vm0 = vcmask 130048  }
   0x7   :  { %1026 = vset.pattern.permute.xlu0 %v1088_v2  ;;  %73 = vmatpush.msra.mxu0 %v51_v1  ;;  %958 = vst [vmem:[%s1361_s3] sm:$0xff] %v1089_v3  ;;  %v50_v5 = vld [vmem:[%s1360_s2] sm:$0xff]  ;;  %v21_v6 = vld [vmem:[%s1359_s1 + $0x8] sm:$0xff]  ;;  %v83_v7 = vld [vmem:[%s1360_s2 + $0x18] sm:$0xff]  ;;  %vm119_vm5 = vcmask 261120   ;;  %s1202_s30 = sld [smem:[#allocation5]]  ;;  %vm227_vm9 = vcmask 254976  }
   0x8   :  { %27 = vperm.xlu0 %1026, %v20_v0   ;;  %959 = vst [vmem:[%s1361_s3 + $0x8] sm:$0x3f] %v1089_v3  ;;  %1027 = vset.pattern.permute.xlu1 %v1088_v2  ;;  %v82_v8 = vld [vmem:[%s1360_s2 + $0x10] sm:$0xff]  ;;  %v23_v9 = vld [vmem:[%s1359_s1 + $0x18] sm:$0x3f]  ;;  %v1147_v11 = vand.u32 127, %v24_v10 }
   0x9   :  { %74 = vmatpush.msra.mxu0 %v50_v5  ;;  %30 = vperm.xlu1 %1027, %v21_v6   ;;  %v152_v16 = vld [vmem:[%s1360_s2 + $0x78] sm:$0xff]  ;;  %v115_v18 = vld [vmem:[%s1360_s2 + $0x30] sm:$0xff]  ;;  %v114_v20 = vld [vmem:[%s1360_s2 + $0x28] sm:$0xff]  ;;  %s1206_s4 = sld [smem:[#allocation5 + $0x1]]  ;;  %v185_v37 = vshrl.u32 %v24_v10, 7 }
   0xa   :  { %104 = vmatpush.msra.mxu1 %v83_v7  ;;  %v116_v17 = vld [vmem:[%s1360_s2 + $0x38] sm:$0xff]  ;;  %v151_v19 = vld [vmem:[%s1360_s2 + $0x70] sm:$0xff]  ;;  %1018 = vmatpush.msra.mxu3 %v152_v16  ;;  %v113_v24 = vld [vmem:[%s1360_s2 + $0x20] sm:$0xff] }
   0xb   :  { %173 = vmatpush.msrb.mxu0 %v152_v16  ;;  %138 = vmatpush.msra.mxu2 %v116_v17  ;;  %v150_v26 = vld [vmem:[%s1360_s2 + $0x68] sm:$0xff]  ;;  %v149_v27 = vld [vmem:[%s1360_s2 + $0x60] sm:$0xff]  ;;  %v197_v28 = vld [vmem:[%s1360_s2 + $0x58] sm:$0xff]  ;;  %vm186_vm6 = vcmp.eq.s32.totalorder %v185_v37, 0  ;;  %vm190_vm7 = vcmp.eq.s32.totalorder %v185_v37, 1 }
   0xc   :  { %105 = vmatpush.msra.mxu1 %v82_v8  ;;  %1019 = vmatpush.msra.mxu3 %v151_v19  ;;  %v196_v29 = vld [vmem:[%s1360_s2 + $0x50] sm:$0xff]  ;;  %v195_v30 = vld [vmem:[%s1360_s2 + $0x48] sm:$0xff]  ;;  %v194_v31 = vld [vmem:[%s1360_s2 + $0x40] sm:$0xff] }
   0xd   :  { %139 = vmatpush.msra.mxu2 %v115_v18  ;;  %174 = vmatpush.msrb.mxu0 %v151_v19  ;;  %v1028_v38 = vld [vmem:[%s1360_s2 + $0x100] ss:$0 sm:$0xff]  ;;  %v188_v40 = vstv %s1202_s30  ;;  %s1090_s30 = smov 32  }
   0xe   :  { %1020 = vmatpush.msra.mxu3 %v150_v26  ;;  %244 = vmatpush.msrb.mxu1 %v197_v28  ;;  %v189_v44 = vsel %vm186_vm6, %v188_v40, 0  ;;  %vm833_vm6 = vcmask 1040384  }
   0xf   :  { %140 = vmatpush.msra.mxu2 %v114_v20  ;;  %175 = vmatpush.msrb.mxu0 %v150_v26  ;;  %v192_v45 = vstv %s1206_s4  ;;  %v475_v26 = vld [vmem:[%s1360_s2 + $0x80] sm:$0xff] }
  0x10   :  { %33 = vperm.xlu0 %1026, %v22_v4   ;;  %1021 = vmatpush.msra.mxu3 %v149_v27  ;;  %v1218_v46 = vsel %vm190_vm7, %v192_v45, %v189_v44  ;;  %vm781_vm7 = vcmp.lt.s32.totalorder %v1147_v11, %v188_v40 }
  0x11   :  { %36 = vperm.xlu1 %1027, %v23_v9   ;;  %141 = vmatpush.msra.mxu2 %v113_v24  ;;  %vm223_vm8 = vcmp.gt.s32.totalorder %v1218_v46, 0  ;;  %vm257_vm10 = vcmp.gt.s32.totalorder %v1218_v46, 1  ;;  %vm293_vm11 = vcmp.gt.s32.totalorder %v1218_v46, 2  ;;  %vm329_vm12 = vcmp.gt.s32.totalorder %v1218_v46, 3  ;;  %v477_v24 = vld [vmem:[%s1360_s2 + $0x90] sm:$0xff] }
  0x12   :  { %176 = vmatpush.msrb.mxu0 %v149_v27  ;;  %316 = vmatpush.msrb.mxu3 %v197_v28  ;;  %vm362_vm13 = vcmp.gt.s32.totalorder %v1218_v46, 4  ;;  %vm395_vm14 = vcmp.gt.s32.totalorder %v1218_v46, 5  ;;  %vm431_vm15 = vcmp.gt.s32.totalorder %v1218_v46, 6 }
  0x13   :  { %280 = vmatpush.msrb.mxu2 %v197_v28  ;;  %245 = vmatpush.msrb.mxu1 %v196_v29 }
  0x14   :  { %317 = vmatpush.msrb.mxu3 %v196_v29 }
  0x15   :  { %281 = vmatpush.msrb.mxu2 %v196_v29  ;;  %246 = vmatpush.msrb.mxu1 %v195_v30 }
  0x16   :  { %318 = vmatpush.msrb.mxu3 %v195_v30 }
  0x17   :  { %282 = vmatpush.msrb.mxu2 %v195_v30  ;;  %247 = vmatpush.msrb.mxu1 %v194_v31 }
  0x18   :  { %319 = vmatpush.msrb.mxu3 %v194_v31 }
  0x19   :  { %283 = vmatpush.msrb.mxu2 %v194_v31 }
  0x7a   :  { %v28_v12 = vpop.permute.xlu0 %27 }
  0x7b   :  { %vm38_vm1 = vcmp.eq.s32.totalorder %v28_v12, %v1147_v11  ;;  %v31_v21 = vpop.permute.xlu1 %30 }
  0x7c   :  { %v978_v13 = vsel %vm38_vm1, 1.0, %v1089_v3  ;;  %vm39_vm3 = vcmp.eq.s32.totalorder %v31_v21, %v1147_v11  ;;  %vm533_vm1 = vcmask 257026  }
  0x7d   :  { %982 = vmatmul.msk.f32.vlgmr.msra.gmra.mxu0 %vm52_vm0, %v978_v13  ;;  %v979_v22 = vsel %vm39_vm3, 1.0, %v1089_v3  ;;  %vm595_vm3 = vcmask 261126  }
  0x7e   :  { %213 = vmatpush.msra.mxu0 %v197_v28 }
  0x80   :  { %214 = vmatpush.msra.mxu0 %v196_v29 }
  0x82   :  { %v34_v14 = vpop.permute.xlu0 %33  ;;  %215 = vmatpush.msra.mxu0 %v195_v30 }
  0x83   :  { %vm40_vm2 = vcmp.eq.s32.totalorder %v34_v14, %v1147_v11  ;;  %v37_v23 = vpop.permute.xlu1 %36 }
  0x84   :  { %v980_v15 = vsel %vm40_vm2, 1.0, %v1089_v3  ;;  %vm41_vm4 = vcmp.eq.s32.totalorder %v37_v23, %v1147_v11  ;;  %216 = vmatpush.msra.mxu0 %v194_v31  ;;  %v478_v23 = vld [vmem:[%s1360_s2 + $0x98] sm:$0xff]  ;;  %vm564_vm2 = vcmask 259076  }
  0x85   :  { %984 = vmatmul.msk.f32.vlgmr.msra.gmra.mxu1 %vm52_vm0, %v980_v15  ;;  %983 = vmatmul.msk.f32.gmra.mxu0 %vm52_vm0, %v979_v22  ;;  %v981_v25 = vsel %vm41_vm4, 1.0, %v1089_v3  ;;  %vm692_vm4 = vcmask 1046528  }
  0x86   :  { %382 = vmatpush.msra.mxu1 %v197_v28 }
  0x88   :  { %383 = vmatpush.msra.mxu1 %v196_v29 }
  0x8a   :  { %384 = vmatpush.msra.mxu1 %v195_v30 }
  0x8c   :  { %385 = vmatpush.msra.mxu1 %v194_v31 }
  0x8d   :  { %985 = vmatmul.msk.f32.gmra.mxu1 %vm52_vm0, %v981_v25  ;;  %v476_v25 = vld [vmem:[%s1360_s2 + $0x88] sm:$0xff]  ;;  %vm467_vm0 = vcmp.gt.s32.totalorder %v1218_v46, 7 }
  0xfa   :  { %v76_v32 = vpop.f32.mrf.mxu0 }
  0xfb   :  { %986 = vmatmul.msk.f32.vlgmr.msra.gmra.mxu2 %vm119_vm5, %v76_v32 }
  0xfc   :  { %418 = vmatpush.msra.mxu2 %v197_v28 }
  0xfe   :  { %419 = vmatpush.msra.mxu2 %v196_v29 }
 0x100   :  { %420 = vmatpush.msra.mxu2 %v195_v30 }
 0x102   :  { %v107_v33 = vpop.f32.mrf.mxu1  ;;  %421 = vmatpush.msra.mxu2 %v194_v31  ;;  %v79_v34 = vpop.f32.mrf.mxu0 }
 0x103   :  { %988 = vmatmul.msk.f32.vlgmr.msrb.gmra.mxu0 %vm119_vm5, %v107_v33  ;;  %987 = vmatmul.msk.f32.gmra.mxu2 %vm119_vm5, %v79_v34  ;;  %v1029_v33 = vld [vmem:[%s1360_s2 + $0x101] ss:$0 sm:$0xff] }
 0x104   :  { %352 = vmatpush.msrb.mxu0 %v197_v28 }
 0x106   :  { %353 = vmatpush.msrb.mxu0 %v196_v29 }
 0x108   :  { %354 = vmatpush.msrb.mxu0 %v195_v30 }
 0x10a   :  { %355 = vmatpush.msrb.mxu0 %v194_v31  ;;  %v110_v35 = vpop.f32.mrf.mxu1 }
 0x10b   :  { %217 = vmatmul.f32.vlgmr.msra.gmra.mxu0 %v1089_v3  ;;  %989 = vmatmul.msk.f32.vlgmr.msra.gmra.mxu3 %vm119_vm5, %v110_v35 }
 0x10c   :  { %454 = vmatpush.msra.mxu3 %v197_v28  ;;  %494 = vmatpush.msra.mxu0 %v478_v23 }
 0x10e   :  { %455 = vmatpush.msra.mxu3 %v196_v29  ;;  %495 = vmatpush.msra.mxu0 %v477_v24 }
 0x110   :  { %456 = vmatpush.msra.mxu3 %v195_v30  ;;  %496 = vmatpush.msra.mxu0 %v476_v25 }
 0x112   :  { %457 = vmatpush.msra.mxu3 %v194_v31  ;;  %497 = vmatpush.msra.mxu0 %v475_v26 }
 0x17e   :  { %v143_v39 = vpop.f32.mrf.mxu2 }
 0x17f   :  { %v144_v41 = vadd.f32 %v1028_v38, %v143_v39 }
 0x180   :  { %v1204_v36 = vpop.f32.mrf.mxu0 }
 0x181   :  { %v179_v34 = vadd.f32 %v1029_v33, %v1204_v36 }
 0x186   :  { %v146_v55 = vpop.f32.mrf.mxu2 }
 0x187   :  { %v1234_v5 = vadd.f32 %v1028_v38, %v146_v55 }
 0x188   :  { %v218_v42 = vpop.f32.mrf.mxu0 }
 0x189   :  { %v221_v43 = vadd.f32 %v218_v42, %v144_v41 }
 0x18b   :  { %1031 = vtanh.f32 %v221_v43 }
 0x18e   :  { %v1229_v62 = vpop.f32.mrf.mxu3 }
 0x191   :  { %v1032_v47 = vpop.eup %1031 }
 0x192   :  { %v226_v48 = vsel %vm223_vm8, %v1032_v47, 0.0  ;;  %vm783_vm8 = vcmask 63488  }
 0x193   :  { %228 = vst.msk [vmem:[#allocation2] sm:$0x3] %vm227_vm9, %v226_v48  ;;  %991 = vmatmul.msk.f32.vlgmr.msrb.gmra.mxu1 %vm119_vm5, %v226_v48 }
 0x194   :  { %520 = vmatpush.msrb.mxu1 %v478_v23 }
 0x196   :  { %521 = vmatpush.msrb.mxu1 %v477_v24 }
 0x198   :  { %522 = vmatpush.msrb.mxu1 %v476_v25 }
 0x19a   :  { %523 = vmatpush.msrb.mxu1 %v475_v26 }
 0x210   :  { %v249_v49 = vpop.f32.mrf.mxu1 }
 0x211   :  { %v253_v50 = vrot.slane %v249_v49, 6 }
 0x213   :  { %v255_v51 = vadd.f32 %v253_v50, %v144_v41 }
 0x215   :  { %1033 = vtanh.f32 %v255_v51 }
 0x21b   :  { %v1034_v52 = vpop.eup %1033 }
 0x21c   :  { %v261_v53 = vrot.slane %v1034_v52, 2 }
 0x21e   :  { %v263_v54 = vsel %vm257_vm10, %v261_v53, %v226_v48 }
 0x21f   :  { %264 = vst.msk [vmem:[#allocation2 + $0x2] sm:$0x3] %vm227_vm9, %v263_v54  ;;  %992 = vmatmul.msk.f32.vlgmr.msrb.gmra.mxu2 %vm119_vm5, %v263_v54 }
 0x220   :  { %551 = vmatpush.msrb.mxu2 %v478_v23 }
 0x222   :  { %552 = vmatpush.msrb.mxu2 %v477_v24 }
 0x224   :  { %553 = vmatpush.msrb.mxu2 %v476_v25 }
 0x226   :  { %554 = vmatpush.msrb.mxu2 %v475_v26 }
 0x2a2   :  { %v285_v56 = vpop.f32.mrf.mxu2 }
 0x2a3   :  { %v289_v57 = vrot.slane %v285_v56, 4  ;;  %v182_v56 = vadd.f32 %v1029_v33, %v1229_v62  ;;  %v697_v62 = vld [vmem:[%s1360_s2 + $0xb8] sm:$0xff] }
 0x2a5   :  { %v291_v58 = vadd.f32 %v289_v57, %v144_v41 }
 0x2a7   :  { %1035 = vtanh.f32 %v291_v58 }
 0x2ad   :  { %v1036_v59 = vpop.eup %1035 }
 0x2ae   :  { %v297_v60 = vrot.slane %v1036_v59, 4 }
 0x2b0   :  { %v299_v61 = vsel %vm293_vm11, %v297_v60, %v263_v54 }
 0x2b1   :  { %300 = vst.msk [vmem:[#allocation2 + $0x4] sm:$0x3] %vm227_vm9, %v299_v61  ;;  %993 = vmatmul.msk.f32.vlgmr.msrb.gmra.mxu3 %vm119_vm5, %v299_v61 }
 0x2b2   :  { %582 = vmatpush.msrb.mxu3 %v478_v23 }
 0x2b4   :  { %583 = vmatpush.msrb.mxu3 %v477_v24 }
 0x2b6   :  { %584 = vmatpush.msrb.mxu3 %v476_v25 }
 0x2b8   :  { %585 = vmatpush.msrb.mxu3 %v475_v26 }
 0x334   :  { %v321_v63 = vpop.f32.mrf.mxu3 }
 0x335   :  { %v325_v0 = vrot.slane %v321_v63, 2 }
 0x337   :  { %v327_v1 = vadd.f32 %v325_v0, %v144_v41 }
 0x339   :  { %1037 = vtanh.f32 %v327_v1 }
 0x33f   :  { %v1038_v2 = vpop.eup %1037 }
 0x340   :  { %v333_v3 = vrot.slane %v1038_v2, 6 }
 0x342   :  { %v335_v4 = vsel %vm329_vm12, %v333_v3, %v299_v61  ;;  %v729_v3 = vld [vmem:[%s1360_s2 + $0xf8] sm:$0xff] }
 0x343   :  { %336 = vst.msk [vmem:[#allocation2 + $0x6] sm:$0x3] %vm227_vm9, %v335_v4  ;;  %994 = vmatmul.msk.f32.vlgmr.msrb.gmra.mxu0 %vm119_vm5, %v335_v4 }
 0x344   :  { %613 = vmatpush.msrb.mxu0 %v478_v23 }
 0x346   :  { %614 = vmatpush.msrb.mxu0 %v477_v24 }
 0x348   :  { %615 = vmatpush.msrb.mxu0 %v476_v25 }
 0x34a   :  { %616 = vmatpush.msrb.mxu0 %v475_v26 }
 0x3c0   :  { %v357_v6 = vpop.f32.mrf.mxu0 }
 0x3c1   :  { %v360_v7 = vadd.f32 %v357_v6, %v1234_v5  ;;  %v695_v6 = vld [vmem:[%s1360_s2 + $0xa8] sm:$0xff] }
 0x3c3   :  { %1039 = vtanh.f32 %v360_v7  ;;  %v727_v7 = vld [vmem:[%s1360_s2 + $0xe8] sm:$0xff] }
 0x3c9   :  { %v1040_v8 = vpop.eup %1039 }
 0x3ca   :  { %v365_v9 = vsel %vm362_vm13, %v1040_v8, %v335_v4  ;;  %v696_v4 = vld [vmem:[%s1360_s2 + $0xb0] sm:$0xff]  ;;  %v694_v8 = vld [vmem:[%s1360_s2 + $0xa0] sm:$0xff] }
 0x3cb   :  { %366 = vst.msk [vmem:[#allocation2 + $0x8] sm:$0x3] %vm227_vm9, %v365_v9  ;;  %995 = vmatmul.msk.f32.vlgmr.msra.gmra.mxu1 %vm119_vm5, %v365_v9 }
 0x3cc   :  { %639 = vmatpush.msra.mxu1 %v478_v23 }
 0x3ce   :  { %640 = vmatpush.msra.mxu1 %v477_v24 }
 0x3d0   :  { %641 = vmatpush.msra.mxu1 %v476_v25 }
 0x3d2   :  { %642 = vmatpush.msra.mxu1 %v475_v26 }
 0x448   :  { %v387_v10 = vpop.f32.mrf.mxu1 }
 0x449   :  { %v391_v12 = vrot.slane %v387_v10, 6 }
 0x44b   :  { %v393_v13 = vadd.f32 %v391_v12, %v1234_v5 }
 0x44d   :  { %1041 = vtanh.f32 %v393_v13 }
 0x453   :  { %v1042_v14 = vpop.eup %1041 }
 0x454   :  { %v399_v15 = vrot.slane %v1042_v14, 2 }
 0x456   :  { %v401_v16 = vsel %vm395_vm14, %v399_v15, %v365_v9  ;;  %v726_v9 = vld [vmem:[%s1360_s2 + $0xe0] sm:$0xff]  ;;  %vm808_vm14 = vcmask 64512  }
 0x457   :  { %402 = vst.msk [vmem:[#allocation2 + $0xa] sm:$0x3] %vm227_vm9, %v401_v16  ;;  %996 = vmatmul.msk.f32.vlgmr.msra.gmra.mxu2 %vm119_vm5, %v401_v16 }
 0x458   :  { %669 = vmatpush.msra.mxu2 %v478_v23 }
 0x45a   :  { %670 = vmatpush.msra.mxu2 %v477_v24 }
 0x45c   :  { %671 = vmatpush.msra.mxu2 %v476_v25 }
 0x45e   :  { %672 = vmatpush.msra.mxu2 %v475_v26 }
 0x4da   :  { %v423_v17 = vpop.f32.mrf.mxu2 }
 0x4db   :  { %v427_v18 = vrot.slane %v423_v17, 4 }
 0x4dd   :  { %v429_v19 = vadd.f32 %v427_v18, %v1234_v5 }
 0x4df   :  { %1043 = vtanh.f32 %v429_v19 }
 0x4e5   :  { %v1044_v20 = vpop.eup %1043 }
 0x4e6   :  { %v435_v21 = vrot.slane %v1044_v20, 4 }
 0x4e8   :  { %v437_v22 = vsel %vm431_vm15, %v435_v21, %v401_v16 }
 0x4e9   :  { %438 = vst.msk [vmem:[#allocation2 + $0xc] sm:$0x3] %vm227_vm9, %v437_v22  ;;  %997 = vmatmul.msk.f32.vlgmr.msra.gmra.mxu3 %vm119_vm5, %v437_v22 }
 0x4ea   :  { %715 = vmatpush.msra.mxu3 %v697_v62  ;;  %v922_v62 = vld [vmem:[%s1360_s2 + $0xd0] sm:$0xff] }
 0x4ec   :  { %716 = vmatpush.msra.mxu3 %v696_v4  ;;  %v920_v4 = vld [vmem:[%s1360_s2 + $0xc0] sm:$0xff] }
 0x4ee   :  { %717 = vmatpush.msra.mxu3 %v695_v6 }
 0x4f0   :  { %718 = vmatpush.msra.mxu3 %v694_v8 }
 0x56c   :  { %v459_v27 = vpop.f32.mrf.mxu3 }
 0x56d   :  { %v463_v28 = vrot.slane %v459_v27, 2 }
 0x56f   :  { %v465_v29 = vadd.f32 %v463_v28, %v1234_v5  ;;  %v728_v5 = vld [vmem:[%s1360_s2 + $0xf0] sm:$0xff] }
 0x571   :  { %1045 = vtanh.f32 %v465_v29 }
 0x577   :  { %v1046_v30 = vpop.eup %1045 }
 0x578   :  { %v471_v31 = vrot.slane %v1046_v30, 6 }
 0x57a   :  { %v473_v32 = vsel %vm467_vm0, %v471_v31, %v437_v22 }
 0x57b   :  { %474 = vst.msk [vmem:[#allocation2 + $0xe] sm:$0x3] %vm227_vm9, %v473_v32  ;;  %998 = vmatmul.msk.f32.vlgmr.msra.gmra.mxu0 %vm119_vm5, %v473_v32 }
 0x57c   :  { %742 = vmatpush.msra.mxu0 %v729_v3  ;;  %v921_v3 = vld [vmem:[%s1360_s2 + $0xc8] sm:$0xff] }
 0x57e   :  { %743 = vmatpush.msra.mxu0 %v728_v5 }
 0x580   :  { %744 = vmatpush.msra.mxu0 %v727_v7 }
 0x582   :  { %v683_v39 = vld [vmem:[#allocation2] ss:$2 sm:$0xff]  ;;  %v685_v60 = vld [vmem:[#allocation2 + $0x1] ss:$2 sm:$0xff]  ;;  %745 = vmatpush.msra.mxu0 %v726_v9 }
 0x5f8   :  { %v499_v35 = vpop.f32.mrf.mxu0 }
 0x5f9   :  { %v502_v37 = vadd.f32 %v499_v35, %v179_v34 }
 0x5fb   :  { %1047 = vtanh.f32 %v502_v37 }
 0x601   :  { %v1048_v38 = vpop.eup %1047 }
 0x602   :  { %504 = vst.msk [vmem:[#allocation3] sm:$0x3] %vm227_vm9, %v1048_v38  ;;  %999 = vmatmul.msk.f32.vlgmr.msrb.gmra.mxu1 %vm119_vm5, %v1048_v38 }
 0x603   :  { %1009 = vmatpush.xpose.msk.msrb.mxu1 %vm119_vm5, %v683_v39 }
 0x67f   :  { %v525_v41 = vpop.f32.mrf.mxu1 }
 0x680   :  { %v529_v42 = vrot.slane %v525_v41, 6 }
 0x682   :  { %v531_v43 = vadd.f32 %v529_v42, %v179_v34 }
 0x684   :  { %1049 = vtanh.f32 %v531_v43 }
 0x68a   :  { %v1050_v44 = vpop.eup %1049 }
 0x68b   :  { %534 = vst.msk [vmem:[#allocation3] sm:$0xc] %vm533_vm1, %v1050_v44  ;;  %v536_v36 = vrot.slane %v1050_v44, 2 }
 0x68d   :  { %1000 = vmatmul.msk.f32.vlgmr.msrb.gmra.mxu2 %vm119_vm5, %v536_v36 }
 0x68e   :  { %827 = vmatpush.msrb.mxu2 %v683_v39 }
 0x710   :  { %v556_v46 = vpop.f32.mrf.mxu2 }
 0x711   :  { %v560_v47 = vrot.slane %v556_v46, 4 }
 0x713   :  { %v562_v48 = vadd.f32 %v560_v47, %v179_v34 }
 0x715   :  { %1051 = vtanh.f32 %v562_v48 }
 0x71b   :  { %v1052_v49 = vpop.eup %1051 }
 0x71c   :  { %565 = vst.msk [vmem:[#allocation3] sm:$0x30] %vm564_vm2, %v1052_v49  ;;  %v567_v50 = vrot.slane %v1052_v49, 4 }
 0x71e   :  { %1001 = vmatmul.msk.f32.vlgmr.msrb.gmra.mxu3 %vm119_vm5, %v567_v50 }
 0x7a1   :  { %v587_v51 = vpop.f32.mrf.mxu3 }
 0x7a2   :  { %v591_v52 = vrot.slane %v587_v51, 2 }
 0x7a4   :  { %v593_v53 = vadd.f32 %v591_v52, %v179_v34 }
 0x7a6   :  { %1053 = vtanh.f32 %v593_v53 }
 0x7ac   :  { %v1054_v54 = vpop.eup %1053 }
 0x7ad   :  { %596 = vst.msk [vmem:[#allocation3] sm:$0xc0] %vm595_vm3, %v1054_v54  ;;  %v598_v55 = vrot.slane %v1054_v54, 6  ;;  %vm970_vm3 = vcmask 326912  }
 0x7af   :  { %1002 = vmatmul.msk.f32.vlgmr.msrb.gmra.mxu0 %vm119_vm5, %v598_v55 }
 0x82c   :  { %v618_v57 = vpop.f32.mrf.mxu0 }
 0x82d   :  { %v621_v58 = vadd.f32 %v618_v57, %v182_v56 }
 0x82f   :  { %1055 = vtanh.f32 %v621_v58 }
 0x835   :  { %v1056_v59 = vpop.eup %1055 }
 0x836   :  { %623 = vst.msk [vmem:[#allocation3 + $0x8] sm:$0x3] %vm227_vm9, %v1056_v59  ;;  %1003 = vmatmul.msk.f32.vlgmr.msra.gmra.mxu1 %vm119_vm5, %v1056_v59  ;;  %vm864_vm9 = vcmp.lt.s32.totalorder %v1147_v11, %v192_v45 }
 0x837   :  { %1012 = vmatpush.xpose.msk.msra.mxu1 %vm119_vm5, %v685_v60 }
 0x8b3   :  { %v644_v61 = vpop.f32.mrf.mxu1 }
 0x8b4   :  { %v648_v63 = vrot.slane %v644_v61, 6 }
 0x8b6   :  { %v650_v0 = vadd.f32 %v648_v63, %v182_v56 }
 0x8b8   :  { %1057 = vtanh.f32 %v650_v0 }
 0x8be   :  { %v1058_v1 = vpop.eup %1057 }
 0x8bf   :  { %652 = vst.msk [vmem:[#allocation3 + $0x8] sm:$0xc] %vm533_vm1, %v1058_v1  ;;  %v654_v2 = vrot.slane %v1058_v1, 2 }
 0x8c1   :  { %1004 = vmatmul.msk.f32.vlgmr.msra.gmra.mxu2 %vm119_vm5, %v654_v2  ;;  %v923_v2 = vld [vmem:[%s1360_s2 + $0xd8] sm:$0xff] }
 0x8c2   :  { %908 = vmatpush.msra.mxu2 %v685_v60  ;;  %941 = vmatpush.msrb.mxu3 %v923_v2 }
 0x8c4   :  { %942 = vmatpush.msrb.mxu3 %v922_v62 }
 0x8c6   :  { %943 = vmatpush.msrb.mxu3 %v921_v3 }
 0x8c8   :  { %944 = vmatpush.msrb.mxu3 %v920_v4 }
 0x944   :  { %v674_v10 = vpop.f32.mrf.mxu2 }
 0x945   :  { %v678_v12 = vrot.slane %v674_v10, 4  ;;  %v1030_v10 = vld [vmem:[%s1360_s2 + $0x102] ss:$0 sm:$0xff] }
 0x947   :  { %v680_v13 = vadd.f32 %v678_v12, %v182_v56 }
 0x949   :  { %1059 = vtanh.f32 %v680_v13 }
 0x94f   :  { %v1060_v14 = vpop.eup %1059 }
 0x950   :  { %682 = vst.msk [vmem:[#allocation3 + $0x8] sm:$0x30] %vm564_vm2, %v1060_v14 }
 0x957   :  { %v688_v15 = vld [vmem:[#allocation3 + $0x1] ss:$2 sm:$0x7f]  ;;  %v686_v17 = vld [vmem:[#allocation3] ss:$2 sm:$0x7f] }
 0x958   :  { %v690_v16 = vrot.slane %v688_v15, 1 }
 0x95a   :  { %v693_v18 = vsel %vm692_vm4, %v686_v17, %v690_v16 }
 0x95b   :  { %1005 = vmatmul.msk.f32.vlgmr.msra.gmra.mxu3 %vm119_vm5, %v693_v18  ;;  %1007 = vmatmul.msk.f32.vlgmr.msra.gmra.mxu0 %vm119_vm5, %v693_v18 }
 0x963   :  { %1006 = vmatmul.msk.f32.gmra.mxu3 %vm119_vm5, %v690_v16  ;;  %1008 = vmatmul.msk.f32.gmra.mxu0 %vm119_vm5, %v690_v16 }
 0x9d8   :  { %v747_v9 = vpop.f32.mrf.mxu0 }
 0x9de   :  { %v720_v19 = vpop.f32.mrf.mxu3 }
 0x9df   :  { %1010 = vmatmul.msk.f32.vlgmr.msrb.gmra.mxu1 %vm119_vm5, %v720_v19  ;;  %v834_v21 = vrot.slane %v720_v19, 7 }
 0x9e0   :  { %v750_v15 = vpop.f32.mrf.mxu0 }
 0x9e6   :  { %v723_v20 = vpop.f32.mrf.mxu3 }
 0x9e7   :  { %v835_v22 = vrot.slane %v723_v20, 7 }
 0x9e9   :  { %v836_v23 = vsel %vm833_vm6, %v834_v21, %v835_v22  ;;  %vm972_vm6 = vcmask 324864  }
 0x9ea   :  { %1013 = vmatmul.msk.f32.vlgmr.msra.gmra.mxu1 %vm119_vm5, %v836_v23 }
 0xa5c   :  { %v776_v24 = vpop.f32.mrf.mxu1 }
 0xa5d   :  { %v782_v25 = vsel %vm781_vm7, %v776_v24, -1e+30 }
 0xa5e   :  { %v784_v26 = vsel %vm783_vm8, %v782_v25, -inf }
 0xa5f   :  { %785 = vmax.xlane.f32.xlu2 %v784_v26 }
 0xa67   :  { %v859_v27 = vpop.f32.mrf.mxu1 }
 0xa68   :  { %v865_v28 = vsel %vm864_vm9, %v859_v27, -1e+30 }
 0xa69   :  { %v866_v29 = vsel %vm783_vm8, %v865_v28, -inf }
 0xa6a   :  { %867 = vmax.xlane.f32.xlu2 %v866_v29 }
 0xad2   :  { %v786_v30 = vpop.xlane.xlu2 %785 }
 0xad3   :  { %v787_v31 = vsub.f32 %v782_v25, %v786_v30 }
 0xad5   :  { %v788_v32 = vmul.f32 1.442695, %v787_v31 }
 0xad7   :  { %1061 = vpow2.f32 %v788_v32 }
 0xadd   :  { %v1062_v33 = vpop.eup %1061  ;;  %v868_v40 = vpop.xlane.xlu2 %867 }
 0xade   :  { %v869_v34 = vsub.f32 %v865_v28, %v868_v40  ;;  %v790_v35 = vsel %vm783_vm8, %v1062_v33, 0.0 }
 0xadf   :  { %791 = vadd.xlane.f32.xlu0 %v790_v35 }
 0xae0   :  { %v870_v37 = vmul.f32 1.442695, %v869_v34 }
 0xae2   :  { %1063 = vpow2.f32 %v870_v37 }
 0xae8   :  { %v1064_v38 = vpop.eup %1063 }
 0xae9   :  { %v872_v11 = vsel %vm783_vm8, %v1064_v38, 0.0 }
 0xaea   :  { %873 = vadd.xlane.f32.xlu1 %v872_v11 }
 0xb52   :  { %v792_v45 = vpop.xlane.xlu0 %791 }
 0xb53   :  { %1065 = vrcp.f32 %v792_v45  ;;  %v804_v43 = vand.u32 2147483648, %v792_v45  ;;  %v802_v46 = vand.u32 2147483647, %v792_v45  ;;  %vm798_vm11 = vweird.f32 %v792_v45 }
 0xb55   :  { %v805_v48 = vor.u32 1.1754944e-38, %v804_v43  ;;  %vm803_vm13 = vcmp.eq.f32.partialorder %v802_v46, 8.507059e+37 }
 0xb59   :  { %v1066_v39 = vpop.eup %1065 }
 0xb5a   :  { %v794_v41 = vmul.f32 %v1066_v39, %v792_v45  ;;  %vm799_vm10 = vweird.f32 %v1066_v39 }
 0xb5b   :  { %vm800_vm12 = vmor %vm798_vm11, %vm799_vm10 }
 0xb5c   :  { %v795_v42 = vsub.f32 1.0, %v794_v41 }
 0xb5d   :  { %v874_v44 = vpop.xlane.xlu1 %873 }
 0xb5e   :  { %v796_v36 = vmul.f32 %v1066_v39, %v795_v42  ;;  %1067 = vrcp.f32 %v874_v44  ;;  %v886_v55 = vand.u32 2147483648, %v874_v44  ;;  %v884_v57 = vand.u32 2147483647, %v874_v44 }
 0xb5f   :  { %vm880_vm0 = vweird.f32 %v874_v44 }
 0xb60   :  { %v797_v47 = vadd.f32 %v1066_v39, %v796_v36  ;;  %v887_v59 = vor.u32 1.1754944e-38, %v886_v55  ;;  %vm885_vm2 = vcmp.eq.f32.partialorder %v884_v57, 8.507059e+37 }
 0xb62   :  { %v801_v49 = vsel %vm800_vm12, %v1066_v39, %v797_v47 }
 0xb63   :  { %v806_v50 = vsel %vm803_vm13, %v805_v48, %v801_v49 }
 0xb64   :  { %v1068_v51 = vpop.eup %1067  ;;  %v807_v52 = vmul.f32 %v1062_v33, %v806_v50 }
 0xb65   :  { %v876_v53 = vmul.f32 %v1068_v51, %v874_v44  ;;  %vm881_vm15 = vweird.f32 %v1068_v51 }
 0xb66   :  { %1011 = vmatmul.msk.f32.vlgmr.msrb.gmra.mxu2 %vm808_vm14, %v807_v52  ;;  %vm882_vm1 = vmor %vm880_vm0, %vm881_vm15 }
 0xb67   :  { %v877_v54 = vsub.f32 1.0, %v876_v53 }
 0xb69   :  { %v878_v56 = vmul.f32 %v1068_v51, %v877_v54 }
 0xb6b   :  { %v879_v58 = vadd.f32 %v1068_v51, %v878_v56 }
 0xb6d   :  { %v883_v60 = vsel %vm882_vm1, %v1068_v51, %v879_v58 }
 0xb6e   :  { %v888_v61 = vsel %vm885_vm2, %v887_v59, %v883_v60 }
 0xb6f   :  { %v889_v63 = vmul.f32 %v1064_v38, %v888_v61 }
 0xb71   :  { %1015 = vmatmul.msk.f32.vlgmr.msra.gmra.mxu2 %vm808_vm14, %v889_v63  ;;  %v917_v0 = vrot.slane %v889_v63, 1 }
 0xb73   :  { %v919_v1 = vsel %vm692_vm4, %v807_v52, %v917_v0 }
 0xb74   :  { %964 = vrot.lane.b32.xlu2 %v919_v1, %s1090_s30 }
 0xb7c   :  { %966 = vrot.lane.b32.xlu2 %v917_v0, %s1090_s30 }
 0xbce   :  { %v965_v18 = vpop.permute.xlu2 %964 }
 0xbd6   :  { %v967_v22 = vpop.permute.xlu2 %966 }
 0xbe9   :  { %v829_v5 = vpop.f32.mrf.mxu2 }
 0xbf4   :  { %v910_v6 = vpop.f32.mrf.mxu2 }
 0xbf5   :  { %v914_v7 = vrot.slane %v910_v6, 1 }
 0xbf7   :  { %v916_v8 = vsel %vm692_vm4, %v829_v5, %v914_v7  ;;  %vm961_vm4 = vcmask 259072  }
 0xbf8   :  { %1016 = vmatmul.msk.f32.vlgmr.msrb.gmra.mxu3 %vm119_vm5, %v916_v8 }
 0xc00   :  { %1017 = vmatmul.msk.f32.gmra.mxu3 %vm119_vm5, %v914_v7 }
 0xc7b   :  { %v946_v12 = vpop.f32.mrf.mxu3 }
 0xc7c   :  { %v947_v13 = vadd.f32 %v946_v12, %v747_v9 }
 0xc7e   :  { %v954_v14 = vadd.f32 %v1030_v10, %v947_v13 }
 0xc80   :  { %1069 = vtanh.f32 %v954_v14 }
 0xc83   :  { %v949_v16 = vpop.f32.mrf.mxu3 }
 0xc84   :  { %v950_v17 = vadd.f32 %v949_v16, %v750_v15 }
 0xc86   :  { %v1070_v19 = vpop.eup %1069  ;;  %v955_v20 = vadd.f32 %v1030_v10, %v950_v17 }
 0xc87   :  { %960 = vst.msk [vmem:[%s1361_s3] sm:$0xff] %vm119_vm5, %v1070_v19 }
 0xc88   :  { %971 = vst.msk [vmem:[%s1361_s3] sm:$0xff] %vm970_vm3, %v965_v18  ;;  %1071 = vtanh.f32 %v955_v20 }
 0xc8e   :  { %v1072_v21 = vpop.eup %1071 }
 0xc8f   :  { %962 = vst.msk [vmem:[%s1361_s3 + $0x8] sm:$0x3f] %vm961_vm4, %v1072_v21 }
 0xc90   :  { %973 = vst.msk [vmem:[%s1361_s3 + $0x8] sm:$0x3f] %vm972_vm6, %v967_v22 }

</bundles_post_ra>
